<compile_context>
chip_gen: v7x
topology: tpu7x:2x2x1
jax: 0.10.0
libtpu: 0.0.40
codegen_flags: <defaults>
</compile_context>

<pallas_src>
import functools

import jax
import jax.numpy as jnp
from jax import lax
from jax.experimental import pallas as pl
from jax.experimental.pallas import tpu as pltpu


def _cdiv(a, b):
    return -(-a // b)


def _round_up(x, m):
    return ((x + m - 1) // m) * m


@functools.lru_cache(maxsize=1)
def _chip_info():
    """Returns (num_tensorcores, vmem_limit_bytes, per_step_dma_floor_bytes)."""
    kind = ""
    try:
        kind = jax.devices()[0].device_kind.lower()
    except Exception:
        pass
    try:
        vmem_cap = int(pltpu.get_tpu_info().vmem_capacity_bytes)
    except Exception:
        vmem_cap = 64 << 20  # conservative (v7x per-TC physical VMEM)

    dual_tc = ("v4" in kind) or ("v5p" in kind) or ("7" in kind)
    if dual_tc:
        # Second TensorCore gets the split-F axis; clamp VMEM to a safe per-TC
        # figure in case vmem_capacity_bytes reports the per-chip number.
        return 2, min((vmem_cap * 3) // 4, 48 << 20), 1 << 20
    dma_floor = (1 << 19) if "v6" in kind else (384 << 10)
    return 1, min((vmem_cap * 3) // 4, 96 << 20), dma_floor


# ----------------------------------------------------------------------------
# Kernels
# ----------------------------------------------------------------------------
def _gram_vpu_kernel(x_ref, y_ref, o_ref, acc_ref, *, nk, f128, by, ragged):
    """Tiny-batch Gram product on the VPU (no MXU).

    grid = (s: F-splits, k: F-chunk steps)
    x_ref: (bx, ck, 128)   y_ref: (by, ck, 128)   o_ref: (1, by, bx) f32
    acc_ref: (by, bx, 128) f32 lane-resident partial sums.
    """
    s = pl.program_id(0)
    k = pl.program_id(1)

    @pl.when(k == 0)
    def _():
        acc_ref[...] = jnp.zeros_like(acc_ref)

    xv = x_ref[...].astype(jnp.float32)
    yv = y_ref[...].astype(jnp.float32)

    if ragged:  # static: mask chunk-grid overshoot in-kernel (no wrapper pad)
        ck = x_ref.shape[1]
        start = (s * nk + k) * ck
        chunk = lax.broadcasted_iota(jnp.int32, (1, ck, 128), 1) + start
        valid = chunk < f128
        xv = jnp.where(valid, xv, 0.0)
        yv = jnp.where(valid, yv, 0.0)

    for j in range(by):  # static tiny loop (by <= 8): pure VPU MACs
        acc_ref[j] += jnp.sum(xv * yv[j], axis=1)

    @pl.when(k == nk - 1)
    def _():
        # Single cross-lane reduce per split -> (by, bx).
        o_ref[0] = jnp.sum(acc_ref[...], axis=-1)


def _gram_mxu_kernel(x_ref, y_ref, o_ref, *, nk, f, ragged):
    """General Gram product on the MXU, accumulating directly into o_ref.

    grid = (i: A-row tiles, j: B-row tiles, s: F-splits, k: F-chunk steps)
    x_ref: (tm, tk) A tile   y_ref: (tn, tk) B tile   o_ref: (1, tm, tn) f32
    """
    s = pl.program_id(2)
    k = pl.program_id(3)

    @pl.when(k == 0)
    def _():
        o_ref[...] = jnp.zeros_like(o_ref)

    xv = x_ref[...]
    yv = y_ref[...]

    if ragged:  # static: zero the K-tail lanes in-kernel (no wrapper pad)
        tk = x_ref.shape[1]
        start = (s * nk + k) * tk
        col = lax.broadcasted_iota(jnp.int32, (1, tk), 1) + start
        valid = col < f
        xv = jnp.where(valid, xv, 0.0)
        yv = jnp.where(valid, yv, 0.0)

    # Contract both operands on their lane axis -> (tm, tn), f32 accumulation.
    o_ref[0] += lax.dot_general(
        xv, yv,
        dimension_numbers=(((1,), (1,)), ((), ())),
        preferred_element_type=jnp.float32,
    )


# ----------------------------------------------------------------------------
# Wrapper paths
# ----------------------------------------------------------------------------
def _vpu_path(x2, y2, *, n_tc, vmem_limit, dma_floor):
    bx, f = x2.shape
    by = y2.shape[0]
    itemsize = x2.dtype.itemsize
    f128 = f // 128

    # View the feature axis as (chunks, 128): full sublane+lane vreg packing,
    # no in-kernel relayout.
    x3 = x2.reshape(bx, f128, 128)
    y3 = y2.reshape(by, f128, 128)

    budget = (vmem_limit * 4) // 5                      # compiler-scratch headroom
    chunk_bytes = (bx + by) * 128 * itemsize            # HBM bytes per 128-chunk
    floor_ck = max(1, _cdiv(dma_floor, chunk_bytes))    # keep step overhead <~5%

    # Split-F parallel axis only when a 2nd TensorCore exists + enough work.
    ns = n_tc if (n_tc > 1 and f128 >= 2 * n_tc * floor_ck) else 1

    # Step count first (target ~4 for pipeline depth), then chunk size.
    target_nk = 4
    ck = max(floor_ck, _cdiv(f128, ns * target_nk))
    fixed = by * bx * 128 * 4 + 2 * by * bx * 4         # acc scratch + out block
    ck = min(ck, max(1, (budget - fixed) // (2 * chunk_bytes)))
    ck = min(f128, _round_up(ck, 8))                    # sublane-aligned / full

    nk = _cdiv(_cdiv(f128, ns), ck)
    last_blk = _cdiv(f128, ck) - 1
    ragged = (ns * nk * ck) != f128
    n_buf = 3 if (nk >= 3 and fixed + 3 * ck * chunk_bytes <= budget) else 2

    kernel = functools.partial(_gram_vpu_kernel, nk=nk, f128=f128, by=by,
                               ragged=ragged)

    def kmap(s, k):  # clamp: a fully-overshooting block re-reads the last one
        return jnp.minimum(s * nk + k, last_blk)

    def call(num_buf):
        def in_spec(shape):
            im = lambda s, k: (0, kmap(s, k), 0)
            if num_buf > 2:
                return pl.BlockSpec(shape, im, pipeline_mode=pl.Buffered(num_buf))
            return pl.BlockSpec(shape, im)

        return pl.pallas_call(
            kernel,
            out_shape=jax.ShapeDtypeStruct((ns, by, bx), jnp.float32),
            grid_spec=pltpu.PrefetchScalarGridSpec(
                num_scalar_prefetch=0,
                grid=(ns, nk),
                in_specs=[in_spec((bx, ck, 128)), in_spec((by, ck, 128))],
                out_specs=pl.BlockSpec((1, by, bx), lambda s, k: (s, 0, 0)),
                scratch_shapes=[pltpu.VMEM((by, bx, 128), jnp.float32)],
            ),
            compiler_params=pltpu.CompilerParams(
                dimension_semantics=("parallel", "arbitrary"),
                vmem_limit_bytes=int(vmem_limit),
            ),
        )(x3, y3)

    if n_buf > 2:
        try:
            out = call(n_buf)
        except Exception:  # fall back to default double-buffering
            out = call(2)
    else:
        out = call(2)

    out = out[0] if ns == 1 else jnp.sum(out, axis=0)
    return out.T  # (by, bx) -> (bx, by)


def _mxu_path(x2, y2, *, n_tc, vmem_limit, dma_floor):
    bx, f = x2.shape
    by = y2.shape[0]
    itemsize = x2.dtype.itemsize

    # Lane-dense output: larger batch dim on the output's last (lane) axis.
    swap = (min(bx, by) < 128) and (bx > by)
    a2, b2 = (y2, x2) if swap else (x2, y2)
    ba, bb = a2.shape[0], b2.shape[0]

    tm = 256 if ba >= 256 else ba                          # A rows / out sublanes
    tn = 256 if bb >= 256 else (128 if bb >= 128 else bb)  # B rows / out lanes
    ni, nj = _cdiv(ba, tm), _cdiv(bb, tn)

    budget = (vmem_limit * 4) // 5
    fixed = 2 * tm * tn * 4                                # resident f32 out block
    per_tk = (tm + tn) * itemsize
    floor_tk = _round_up(max(128, _cdiv(dma_floor, per_tk)), 128)

    ns = n_tc if (n_tc > 1 and ni * nj == 1 and f >= 2 * n_tc * floor_tk) else 1
    target_nk = 4
    tk = max(floor_tk, _round_up(_cdiv(f, ns * target_nk), 128))
    tk_max = max(128, ((budget - fixed) // (2 * per_tk)) // 128 * 128)
    tk = min(tk, tk_max, _round_up(f, 128))

    nk = _cdiv(_cdiv(f, ns), tk)
    last_blk = _cdiv(f, tk) - 1
    ragged = (ns * nk * tk) != f
    n_buf = 3 if (nk >= 3 and fixed + 3 * tk * per_tk <= budget) else 2

    kernel = functools.partial(_gram_mxu_kernel, nk=nk, f=f, ragged=ragged)

    def kmap(s, k):
        return jnp.minimum(s * nk + k, last_blk)

    def call(num_buf):
        def in_spec(shape, im):
            if num_buf > 2:
                return pl.BlockSpec(shape, im, pipeline_mode=pl.Buffered(num_buf))
            return pl.BlockSpec(shape, im)

        return pl.pallas_call(
            kernel,
            out_shape=jax.ShapeDtypeStruct((ns, ba, bb), jnp.float32),
            grid_spec=pltpu.PrefetchScalarGridSpec(
                num_scalar_prefetch=0,
                grid=(ni, nj, ns, nk),
                in_specs=[
                    in_spec((tm, tk), lambda i, j, s, k: (i, kmap(s, k))),
                    in_spec((tn, tk), lambda i, j, s, k: (j, kmap(s, k))),
                ],
                out_specs=pl.BlockSpec((1, tm, tn),
                                       lambda i, j, s, k: (s, i, j)),
            ),
            compiler_params=pltpu.CompilerParams(
                dimension_semantics=("parallel", "parallel", "parallel",
                                     "arbitrary"),
                vmem_limit_bytes=int(vmem_limit),
            ),
        )(a2, b2)

    if n_buf > 2:
        try:
            out = call(n_buf)
        except Exception:
            out = call(2)
    else:
        out = call(2)

    out = out.reshape(ba, bb) if ns == 1 else jnp.sum(out, axis=0)
    return out.T if swap else out


# ----------------------------------------------------------------------------
# Public entry point
# ----------------------------------------------------------------------------
def inner_critic(x, y):
    """Pallas TPU forward of InnerCritic: x.view(Bx,-1) @ y.view(By,-1).T."""
    bx, by = x.shape[0], y.shape[0]
    out_dtype = jnp.result_type(x.dtype, y.dtype)

    x2 = x.reshape(bx, -1)  # row-major flatten == torch .view on contiguous
    y2 = y.reshape(by, -1)
    f = x2.shape[1]
    assert y2.shape[1] == f, "flattened feature dims must match"
    if bx == 0 or by == 0 or f == 0:
        return jnp.zeros((bx, by), out_dtype)
    if x2.dtype != y2.dtype:  # promote only on mismatch; never narrow to bf16 here
        x2, y2 = x2.astype(out_dtype), y2.astype(out_dtype)

    n_tc, vmem_limit, dma_floor = _chip_info()
    if max(bx, by) <= 8 and f >= 128 and f % 128 == 0:
        out = _vpu_path(x2, y2, n_tc=n_tc, vmem_limit=vmem_limit,
                        dma_floor=dma_floor)
    else:
        out = _mxu_path(x2, y2, n_tc=n_tc, vmem_limit=vmem_limit,
                        dma_floor=dma_floor)
    return out.astype(out_dtype)


# ----------------------------------------------------------------------------
# Self-test
# ----------------------------------------------------------------------------
def _ref(x, y):
    return jnp.matmul(x.reshape(x.shape[0], -1),
                      y.reshape(y.shape[0], -1).T,
                      precision=lax.Precision.HIGHEST)


def _check(x, y, tag):
    out = jax.block_until_ready(inner_critic(x, y))
    ref = _ref(x, y)
    assert out.shape == ref.shape, (tag, out.shape, ref.shape)
    assert jnp.allclose(out, ref, rtol=1e-3, atol=1e-2), f"mismatch: {tag}"


if __name__ == "__main__":
    key = jax.random.PRNGKey(0)
    k1, k2, k3, k4, k5, k6, k7, k8, k9, k10 = jax.random.split(key, 10)

    # 1) Canonical InnerCritic shapes: NCHW, batch 2 -> F = 1024 (VPU path).
    x = jax.random.normal(k1, (2, 4, 16, 16), dtype=jnp.float32)
    y = jax.random.normal(k2, (2, 4, 16, 16), dtype=jnp.float32)
    _check(x, y, "b2_f1024_vpu")

    # 2) Larger F (2 x 600 x 128) -> multi-step reduction with in-kernel
    #    tail-chunk masking (VPU path, triple-buffered inputs when supported).
    xb = jax.random.normal(k3, (2, 600, 128), dtype=jnp.float32)
    yb = jax.random.normal(k4, (2, 600, 128), dtype=jnp.float32)
    _check(xb, yb, "b2_f76800_vpu_ragged")

    # 3) F not a multiple of 128 -> MXU path with in-kernel lane masking
    #    (no wrapper-side padding pass).
    xc = jax.random.normal(k5, (2, 3, 16, 10), dtype=jnp.float32)
    yc = jax.random.normal(k6, (2, 3, 16, 10), dtype=jnp.float32)
    _check(xc, yc, "b2_f480_mxu_ragged")

    # 4) Asymmetric batch -> lane-dense output orientation (operand swap) and a
    #    batch-tiled parallel grid axis.
    xd = jax.random.normal(k7, (512, 256), dtype=jnp.float32)
    yd = jax.random.normal(k8, (8, 256), dtype=jnp.float32)
    _check(xd, yd, "b512x8_mxu_swap")

    # 5) Non-tile-aligned batches -> partial edge blocks on both output axes.
    xe = jax.random.normal(k9, (300, 256), dtype=jnp.float32)
    ye = jax.random.normal(k10, (200, 256), dtype=jnp.float32)
    _check(xe, ye, "b300x200_mxu_partial")

    print("KERNEL_OK")
</pallas_src>

<mosaic_0001>
module attributes {stable_mosaic.version = 11 : i64} {
  func.func @_gram_vpu_kernel(%arg0: i32, %arg1: i32, %arg2: memref<2x8x128xf32, #tpu.memory_space<vmem>>, %arg3: memref<2x8x128xf32, #tpu.memory_space<vmem>>, %arg4: memref<1x2x2xf32, #tpu.memory_space<vmem>>, %arg5: memref<2x2x128xf32, #tpu.memory_space<vmem>>) attributes {dimension_semantics = [#tpu.dimension_semantics<parallel>, #tpu.dimension_semantics<arbitrary>], iteration_bounds = array<i64: 1, 1>, scalar_prefetch = 0 : i64, scratch_operands = 1 : i64, tpu.core_type = #tpu.core_type<tc>, window_params = [{transform_indices = @transform_0, window_bounds = array<i64: 2, 8, 128>}, {transform_indices = @transform_1, window_bounds = array<i64: 2, 8, 128>}, {transform_indices = @transform_2, window_bounds = array<i64: 1, 2, 2>}]} {
    %c0_i32 = arith.constant 0 : i32
    %0 = arith.cmpi eq, %arg1, %c0_i32 : i32
    %1 = arith.extui %0 : i1 to i32
    %c0_i32_0 = arith.constant 0 : i32
    %2 = arith.cmpi ne, %1, %c0_i32_0 : i32
    scf.if %2 {
      %cst_20 = arith.constant 0.000000e+00 : f32
      %32 = vector.broadcast %cst_20 : f32 to vector<2x2x128xf32>
      %c0_21 = arith.constant 0 : index
      %c0_22 = arith.constant 0 : index
      %c0_23 = arith.constant 0 : index
      %33 = vector.load %arg5[%c0_21, %c0_22, %c0_23] : memref<2x2x128xf32, #tpu.memory_space<vmem>>, vector<2x2x128xf32>
      tpu.vector_store %arg5[%c0_21, %c0_22, %c0_23], %32 {strides = array<i32>} : memref<2x2x128xf32, #tpu.memory_space<vmem>>, vector<2x2x128xf32>,
    } else {
    }
    %c0 = arith.constant 0 : index
    %c0_1 = arith.constant 0 : index
    %c0_2 = arith.constant 0 : index
    %3 = vector.load %arg2[%c0, %c0_1, %c0_2] : memref<2x8x128xf32, #tpu.memory_space<vmem>>, vector<2x8x128xf32>
    %c0_3 = arith.constant 0 : index
    %c0_4 = arith.constant 0 : index
    %c0_5 = arith.constant 0 : index
    %4 = vector.load %arg3[%c0_3, %c0_4, %c0_5] : memref<2x8x128xf32, #tpu.memory_space<vmem>>, vector<2x8x128xf32>
    %c0_6 = arith.constant 0 : index
    %c0_7 = arith.constant 0 : index
    %c0_8 = arith.constant 0 : index
    %5 = vector.load %arg5[%c0_6, %c0_7, %c0_8] : memref<2x2x128xf32, #tpu.memory_space<vmem>>, vector<1x2x128xf32>
    %6 = vector.shape_cast %5 : vector<1x2x128xf32> to vector<2x128xf32>
    %7 = vector.extract_strided_slice %4 {offsets = [0, 0, 0], sizes = [1, 8, 128], strides = [1, 1, 1]} : vector<2x8x128xf32> to vector<1x8x128xf32>
    %8 = vector.shape_cast %7 : vector<1x8x128xf32> to vector<8x128xf32>
    %9 = vector.shape_cast %8 : vector<8x128xf32> to vector<1x8x128xf32>
    %10 = vector.broadcast %9 : vector<1x8x128xf32> to vector<2x8x128xf32>
    %11 = arith.mulf %3, %10 : vector<2x8x128xf32>
    %cst = arith.constant dense<0.000000e+00> : vector<2x128xf32>
    %12 = vector.multi_reduction <add>, %11, %cst [1] : vector<2x8x128xf32> to vector<2x128xf32>
    %13 = arith.addf %6, %12 : vector<2x128xf32>
    %c0_9 = arith.constant 0 : index
    %c0_10 = arith.constant 0 : index
    %c0_11 = arith.constant 0 : index
    %14 = vector.load %arg5[%c0_9, %c0_10, %c0_11] : memref<2x2x128xf32, #tpu.memory_space<vmem>>, vector<1x2x128xf32>
    %15 = vector.shape_cast %14 : vector<1x2x128xf32> to vector<2x128xf32>
    %16 = vector.shape_cast %13 : vector<2x128xf32> to vector<1x2x128xf32>
    tpu.vector_store %arg5[%c0_9, %c0_10, %c0_11], %16 {strides = array<i32>} : memref<2x2x128xf32, #tpu.memory_space<vmem>>, vector<1x2x128xf32>,
    %c1 = arith.constant 1 : index
    %c0_12 = arith.constant 0 : index
    %c0_13 = arith.constant 0 : index
    %17 = vector.load %arg5[%c1, %c0_12, %c0_13] : memref<2x2x128xf32, #tpu.memory_space<vmem>>, vector<1x2x128xf32>
    %18 = vector.shape_cast %17 : vector<1x2x128xf32> to vector<2x128xf32>
    %19 = vector.extract_strided_slice %4 {offsets = [1, 0, 0], sizes = [1, 8, 128], strides = [1, 1, 1]} : vector<2x8x128xf32> to vector<1x8x128xf32>
    %20 = vector.shape_cast %19 : vector<1x8x128xf32> to vector<8x128xf32>
    %21 = vector.shape_cast %20 : vector<8x128xf32> to vector<1x8x128xf32>
    %22 = vector.broadcast %21 : vector<1x8x128xf32> to vector<2x8x128xf32>
    %23 = arith.mulf %3, %22 : vector<2x8x128xf32>
    %cst_14 = arith.constant dense<0.000000e+00> : vector<2x128xf32>
    %24 = vector.multi_reduction <add>, %23, %cst_14 [1] : vector<2x8x128xf32> to vector<2x128xf32>
    %25 = arith.addf %18, %24 : vector<2x128xf32>
    %c1_15 = arith.constant 1 : index
    %c0_16 = arith.constant 0 : index
    %c0_17 = arith.constant 0 : index
    %26 = vector.load %arg5[%c1_15, %c0_16, %c0_17] : memref<2x2x128xf32, #tpu.memory_space<vmem>>, vector<1x2x128xf32>
    %27 = vector.shape_cast %26 : vector<1x2x128xf32> to vector<2x128xf32>
    %28 = vector.shape_cast %25 : vector<2x128xf32> to vector<1x2x128xf32>
    tpu.vector_store %arg5[%c1_15, %c0_16, %c0_17], %28 {strides = array<i32>} : memref<2x2x128xf32, #tpu.memory_space<vmem>>, vector<1x2x128xf32>,
    %c0_i32_18 = arith.constant 0 : i32
    %29 = arith.cmpi eq, %arg1, %c0_i32_18 : i32
    %30 = arith.extui %29 : i1 to i32
    %c0_i32_19 = arith.constant 0 : i32
    %31 = arith.cmpi ne, %30, %c0_i32_19 : i32
    scf.if %31 {
      %c0_20 = arith.constant 0 : index
      %c0_21 = arith.constant 0 : index
      %c0_22 = arith.constant 0 : index
      %32 = vector.load %arg5[%c0_20, %c0_21, %c0_22] : memref<2x2x128xf32, #tpu.memory_space<vmem>>, vector<2x2x128xf32>
      %cst_23 = arith.constant dense<0.000000e+00> : vector<2x2xf32>
      %33 = vector.multi_reduction <add>, %32, %cst_23 [2] : vector<2x2x128xf32> to vector<2x2xf32>
      %c0_24 = arith.constant 0 : index
      %c0_25 = arith.constant 0 : index
      %c0_26 = arith.constant 0 : index
      %34 = vector.load %arg4[%c0_24, %c0_25, %c0_26] : memref<1x2x2xf32, #tpu.memory_space<vmem>>, vector<1x2x2xf32>
      %35 = vector.shape_cast %34 : vector<1x2x2xf32> to vector<2x2xf32>
      %36 = vector.shape_cast %33 : vector<2x2xf32> to vector<1x2x2xf32>
      tpu.vector_store %arg4[%c0_24, %c0_25, %c0_26], %36 {strides = array<i32>} : memref<1x2x2xf32, #tpu.memory_space<vmem>>, vector<1x2x2xf32>,
    } else {
    }
    return
  }
  func.func @transform_0(%arg0: i32, %arg1: i32) -> (i32, i32, i32) {
    %c1_i32 = arith.constant 1 : i32
    %0 = arith.muli %arg0, %c1_i32 : i32
    %1 = arith.addi %0, %arg1 : i32
    %c0_i32 = arith.constant 0 : i32
    %2 = arith.minsi %1, %c0_i32 : i32
    %c0_i32_0 = arith.constant 0 : i32
    %c0_i32_1 = arith.constant 0 : i32
    %c0_i32_2 = arith.constant 0 : i32
    return %c0_i32_0, %2, %c0_i32_1 : i32, i32, i32
  }
  func.func @transform_1(%arg0: i32, %arg1: i32) -> (i32, i32, i32) {
    %c1_i32 = arith.constant 1 : i32
    %0 = arith.muli %arg0, %c1_i32 : i32
    %1 = arith.addi %0, %arg1 : i32
    %c0_i32 = arith.constant 0 : i32
    %2 = arith.minsi %1, %c0_i32 : i32
    %c0_i32_0 = arith.constant 0 : i32
    %c0_i32_1 = arith.constant 0 : i32
    %c0_i32_2 = arith.constant 0 : i32
    return %c0_i32_0, %2, %c0_i32_1 : i32, i32, i32
  }
  func.func @transform_2(%arg0: i32, %arg1: i32) -> (i32, i32, i32) {
    %c0_i32 = arith.constant 0 : i32
    %c0_i32_0 = arith.constant 0 : i32
    %c0_i32_1 = arith.constant 0 : i32
    return %arg0, %c0_i32, %c0_i32_0 : i32, i32, i32
  }
}

</mosaic_0001>

<bundles_post_ra>
// kernel: tpu_custom_call.1
= control target key start
LH: loop header
LB: loop body
LE: loop exit
PB: predicated region body
PF: predicated region fallthrough
CT: control target
= control target key end

     0   :  { %7 = vsyncpa [#allocation4], 0  ;;  %s296_s0 = inlined_call_operand.hbm [shape: f32[2,8,128], index: 0, kind: input, shape index: {}]   ;;  %s297_s1 = inlined_call_operand.hbm [shape: f32[2,8,128], index: 1, kind: input, shape index: {}]   ;;  %s298_s2 = inlined_call_operand.hbm [shape: f32[1,2,2], index: 2, kind: output, shape index: {}]  }
   0x1   :  { %8 = vsyncpa [#allocation7], 0 }
   0x2   :  { %9 = vsyncpa [#allocation5], 0  ;;  %s236_s9 = smov [#allocation3]   ;;  %s164_s13 = scalar_lea.hbm %s296_s0, 256 }
   0x3   :  { %s20_s10 = sshll.u32 %s236_s9, 4  ;;  %p165_p0 = scmp.ne.s32.totalorder %s296_s0, %s164_s13  ;;  %s21_s10 = int_to_ptr.vmem [resolvable:$true] %s20_s10 }
   0x4   :  { %p168_p1 = scmp.lt.u32.totalorder %s164_s13, %s296_s0 }
   0x6   :  { %p170_p2 = pnand %p168_p1, %p165_p0 }
   0x8   :  { %173 = shalt.err (!%p170_p2)
}
   0x9   :  { %s174_s18 = scalar_lea.vmem %s21_s10, 256  ;;  %p179_p4 = scmp.lt.s32.totalorder %s21_s10, %s21_s10 }
   0xa   :  { %p175_p3 = scmp.ne.s32.totalorder %s21_s10, %s174_s18  ;;  %p180_p5 = scmp.lt.s32.totalorder %s174_s18, %s174_s18 }
   0xc   :  { %p181_p6 = por %p180_p5, %p179_p4 }
   0xe   :  { %p182_p7 = pnand %p181_p6, %p175_p3 }
  0x10   :  { %185 = shalt.err (!%p182_p7)
}
  0x11   :  { %s237_s19 = smov 128   ;;  %s238_s20 = smov 8  }
  0x12   :  { %26 = dma.hbm_to_vmem [thread:$0]  %s296_s0, 256, %s21_s10, [#allocation4], %s237_s19, %s237_s19, %s238_s20  }
  0x13   :  { %s239_s23 = smov [#allocation6]   ;;  %s186_s27 = scalar_lea.hbm %s297_s1, 256 }
  0x14   :  { %s37_s24 = sshll.u32 %s239_s23, 4  ;;  %p187_p8 = scmp.ne.s32.totalorder %s297_s1, %s186_s27  ;;  %s38_s24 = int_to_ptr.vmem [resolvable:$true] %s37_s24 }
  0x15   :  { %p190_p9 = scmp.lt.u32.totalorder %s186_s27, %s297_s1 }
  0x17   :  { %p192_p10 = pnand %p190_p9, %p187_p8 }
  0x19   :  { %195 = shalt.err (!%p192_p10)
}
  0x1a   :  { %s196_s4 = scalar_lea.vmem %s38_s24, 256  ;;  %p201_p12 = scmp.lt.s32.totalorder %s38_s24, %s38_s24 }
  0x1b   :  { %p197_p11 = scmp.ne.s32.totalorder %s38_s24, %s196_s4  ;;  %p202_p13 = scmp.lt.s32.totalorder %s196_s4, %s196_s4 }
  0x1d   :  { %p203_p0 = por %p202_p13, %p201_p12 }
  0x1f   :  { %p204_p1 = pnand %p203_p0, %p197_p11 }
  0x21   :  { %207 = shalt.err (!%p204_p1)
}
  0x22   :  { %43 = dma.hbm_to_vmem [thread:$0]  %s297_s1, 256, %s38_s24, [#allocation7], %s237_s19, %s237_s19, %s238_s20  }
  0x23   :  { %230 = dma.done.wait [#allocation4], 256  }
  0x24   :  { %231 = vsyncadd [#allocation4], 4294967040 }
  0x25   :  { %232 = dma.done.wait [#allocation7], 256  }
  0x26   :  { %233 = vsyncadd [#allocation7], 4294967040  ;;  %v240_v0 = vmov 0.0   ;;  %v62_v1 = vld [vmem:[#allocation3] sm:$0xff]  ;;  %v63_v2 = vld [vmem:[#allocation3 + $0x8] sm:$0xff]  ;;  %vm83_vm0 = vcmask 1041409   ;;  %v124_v43 = vlaneseq }
  0x27   :  { %60 = vst [vmem:[#allocation2] sm:$0x3] %v240_v0  ;;  %61 = vst [vmem:[#allocation2 + $0x2] sm:$0x3] %v240_v0  ;;  %v64_v3 = vld [vmem:[#allocation6] sm:$0xff]  ;;  %v65_v6 = vld [vmem:[#allocation6 + $0x8] sm:$0xff] }
  0x28   :  { %v67_v4 = vmul.f32 %v64_v3, %v62_v1  ;;  %v68_v5 = vmul.f32 %v64_v3, %v63_v2  ;;  %v90_v7 = vmul.f32 %v65_v6, %v62_v1  ;;  %v91_v8 = vmul.f32 %v65_v6, %v63_v2  ;;  %s241_s1 = smov [#allocation8]  }
  0x29   :  { %vm115_vm1 = vcmask 1041408   ;;  %v125_v44 = vand.u32 127, %v124_v43  ;;  %v127_v45 = vshrl.u32 %v124_v43, 7  ;;  %s144_s6 = sshll.u32 %s241_s1, 4  ;;  %vm136_vm2 = vcmask 9216   ;;  %s145_s6 = int_to_ptr.vmem [resolvable:$true] %s144_s6 }
  0x2a   :  { %v69_v9 = vrot.slane %v67_v4, 4  ;;  %v75_v10 = vrot.slane %v68_v5, 4  ;;  %v92_v11 = vrot.slane %v90_v7, 4  ;;  %v98_v12 = vrot.slane %v91_v8, 4  ;;  %s208_s7 = scalar_lea.vmem %s145_s6, 32  ;;  %p213_p3 = scmp.lt.s32.totalorder %s145_s6, %s145_s6 }
  0x2b   :  { %v128_v47 = vsub.s32 %v125_v44, %v127_v45  ;;  %p209_p2 = scmp.ne.s32.totalorder %s145_s6, %s208_s7  ;;  %p214_p4 = scmp.lt.s32.totalorder %s208_s7, %s208_s7 }
  0x2c   :  { %v70_v13 = vadd.f32 %v69_v9, %v67_v4  ;;  %v76_v14 = vadd.f32 %v75_v10, %v68_v5  ;;  %v93_v15 = vadd.f32 %v92_v11, %v90_v7  ;;  %v99_v16 = vadd.f32 %v98_v12, %v91_v8 }
  0x2d   :  { %p215_p5 = por %p214_p4, %p213_p3 }
  0x2e   :  { %v71_v17 = vrot.slane %v70_v13, 2  ;;  %v77_v18 = vrot.slane %v76_v14, 2  ;;  %v94_v19 = vrot.slane %v93_v15, 2  ;;  %v100_v20 = vrot.slane %v99_v16, 2  ;;  %v66_v29 = vld [vmem:[#allocation2] sm:$0x3] }
  0x2f   :  { %v89_v32 = vld [vmem:[#allocation2 + $0x2] sm:$0x3]  ;;  %p216_p6 = pnand %p215_p5, %p209_p2 }
  0x30   :  { %v72_v21 = vadd.f32 %v71_v17, %v70_v13  ;;  %v78_v22 = vadd.f32 %v77_v18, %v76_v14  ;;  %v95_v23 = vadd.f32 %v94_v19, %v93_v15  ;;  %v101_v24 = vadd.f32 %v100_v20, %v99_v16 }
  0x32   :  { %v73_v25 = vrot.slane %v72_v21, 1  ;;  %v79_v26 = vrot.slane %v78_v22, 1  ;;  %v96_v27 = vrot.slane %v95_v23, 1  ;;  %v102_v28 = vrot.slane %v101_v24, 1 }
  0x34   :  { %v74_v30 = vadd.f32 %v73_v25, %v72_v21  ;;  %v80_v31 = vadd.f32 %v79_v26, %v78_v22  ;;  %v97_v33 = vadd.f32 %v96_v27, %v95_v23  ;;  %v103_v34 = vadd.f32 %v102_v28, %v101_v24 }
  0x36   :  { %v84_v35 = vsel %vm83_vm0, %v80_v31, %v74_v30  ;;  %v106_v37 = vsel %vm83_vm0, %v103_v34, %v97_v33 }
  0x37   :  { %v86_v36 = vadd.f32 %v84_v35, %v66_v29  ;;  %v108_v38 = vadd.f32 %v106_v37, %v89_v32 }
  0x39   :  { %87 = vst [vmem:[#allocation2] sm:$0x3] %v86_v36  ;;  %109 = vst [vmem:[#allocation2 + $0x2] sm:$0x3] %v108_v38 }
  0x40   :  { %v113_v39 = vld [vmem:[#allocation2] sm:$0x3]  ;;  %v114_v41 = vld [vmem:[#allocation2 + $0x2] sm:$0x3] }
  0x41   :  { %v116_v40 = vsel %vm115_vm1, %v113_v39, 0.0  ;;  %v119_v42 = vsel %vm115_vm1, %v114_v41, 0.0 }
  0x42   :  { %117 = vadd.xlane.f32.xlu0 %v116_v40 }
  0x46   :  { %120 = vadd.xlane.f32.xlu0 %v119_v42 }
  0xcf   :  { %v118_v46 = vpop.xlane.xlu0 %117 }
  0xd0   :  { %v129_v49 = vrot.slane %v118_v46, %v128_v47 }
  0xd3   :  { %v121_v48 = vpop.xlane.xlu0 %120 }
  0xd4   :  { %v133_v50 = vrot.slane %v121_v48, %v128_v47 }
  0xd6   :  { %v134_v51 = vsel %vm83_vm0, %v133_v50, %v129_v49 }
  0xd7   :  { %137 = vst.msk [vmem:[#allocation8] sm:$0x3] %vm136_vm2, %v134_v51 }
  0xd8   :  { %219 = shalt.err (!%p216_p6)
}
  0xd9   :  { %s220_s10 = scalar_lea.hbm %s298_s2, 32 }
  0xda   :  { %p221_p7 = scmp.ne.s32.totalorder %s298_s2, %s220_s10  ;;  %p224_p8 = scmp.lt.u32.totalorder %s220_s10, %s298_s2 }
  0xdc   :  { %p226_p9 = pnand %p224_p8, %p221_p7 }
  0xde   :  { %229 = shalt.err (!%p226_p9)
}
  0xdf   :  { %147 = dma.vmem_to_hbm [thread:$0]  %s145_s6, 32, %s298_s2, [#allocation5]  }
  0xe0   :  { %234 = dma.done.wait [#allocation5], 32  }
  0xe1   :  { %235 = vsyncadd [#allocation5], 4294967264 }
  0xe2   :  { %151 = vsyncpa [#allocation4], 1 }
  0xe3   :  { %152 = vsyncpa [#allocation7], 1 }
  0xe4   :  { %153 = vsyncpa [#allocation5], 1 }

</bundles_post_ra>
